<compile_context>
chip_gen: v7x
topology: tpu7x:2x2x1
jax: 0.10.0
libtpu: 0.0.40
codegen_flags: <defaults>
</compile_context>

<pallas_src>
import jax
import jax.numpy as jnp
from jax.experimental import pallas as pl
from jax.experimental.pallas import tpu as pltpu

IN_DIM = 100
HID_DIM = 100
OUT_DIM = 12


def _round_up(x, m):
    return ((x + m - 1) // m) * m


def _mlp_kernel(x_ref, w1_ref, b1_ref, w2_ref, b2_ref, o_ref):
    x = x_ref[...]                                                  # (TB, 100)
    h = jnp.dot(x, w1_ref[...], preferred_element_type=jnp.float32)  # MXU
    h = jnp.maximum(h + b1_ref[...], 0.0)                           # bias + ReLU (VPU)
    # Dropout is identity at inference time (see TODO above).
    y = jnp.dot(h, w2_ref[...], preferred_element_type=jnp.float32)  # (TB, 12)
    o_ref[...] = (y + b2_ref[...]).astype(o_ref.dtype)


def data_classifier_visda(x, w1, b1, w2, b2, *, block_b=1024):
    """x: (B, ...) with prod(...) == 100. Returns (B, 12) float32."""
    x2 = x.reshape(x.shape[0], -1)          # input.view(B, -1)
    assert x2.shape[1] == IN_DIM, x2.shape
    B = x2.shape[0]

    # Batch tile: multiple of 8 (sublane), capped at block_b, no larger than
    # needed for small B.
    tb = min(block_b, _round_up(B, 8))
    grid = (pl.cdiv(B, tb),)

    return pl.pallas_call(
        _mlp_kernel,
        out_shape=jax.ShapeDtypeStruct((B, OUT_DIM), jnp.float32),
        grid_spec=pltpu.PrefetchScalarGridSpec(
            num_scalar_prefetch=0,
            grid=grid,
            in_specs=[
                pl.BlockSpec((tb, IN_DIM), lambda i: (i, 0)),        # x: tiled over batch
                pl.BlockSpec((IN_DIM, HID_DIM), lambda i: (0, 0)),   # W1: resident
                pl.BlockSpec((1, HID_DIM), lambda i: (0, 0)),        # b1: resident
                pl.BlockSpec((HID_DIM, OUT_DIM), lambda i: (0, 0)),  # W2: resident
                pl.BlockSpec((1, OUT_DIM), lambda i: (0, 0)),        # b2: resident
            ],
            out_specs=pl.BlockSpec((tb, OUT_DIM), lambda i: (i, 0)),
        ),
        compiler_params=pltpu.CompilerParams(
            # Batch tiles are independent -> shard across TCs on v7x megacore.
            dimension_semantics=("parallel",),
        ),
    )(x2, w1, b1, w2, b2)


def init_params(key):
    """Synthetic init matching nn.Linear shapes (stored transposed as (in, out))."""
    k1, k2, k3, k4 = jax.random.split(key, 4)
    bound1 = 1.0 / jnp.sqrt(IN_DIM)
    bound2 = 1.0 / jnp.sqrt(HID_DIM)
    w1 = jax.random.uniform(k1, (IN_DIM, HID_DIM), jnp.float32, -bound1, bound1)
    b1 = jax.random.uniform(k2, (1, HID_DIM), jnp.float32, -bound1, bound1)
    w2 = jax.random.uniform(k3, (HID_DIM, OUT_DIM), jnp.float32, -bound2, bound2)
    b2 = jax.random.uniform(k4, (1, OUT_DIM), jnp.float32, -bound2, bound2)
    return w1, b1, w2, b2


def reference(x, w1, b1, w2, b2):
    x2 = x.reshape(x.shape[0], -1)
    h = jnp.maximum(x2 @ w1 + b1, 0.0)
    return h @ w2 + b2


if __name__ == "__main__":
    key = jax.random.PRNGKey(0)
    kx, kp = jax.random.split(key)

    # Small shapes consistent with the module: (B, 4, 5, 5) flattens to (B, 100).
    B = 64
    x = jax.random.normal(kx, (B, 4, 5, 5), jnp.float32)
    w1, b1, w2, b2 = init_params(kp)

    out = data_classifier_visda(x, w1, b1, w2, b2)
    out = jax.block_until_ready(out)

    ref = reference(x, w1, b1, w2, b2)
    assert out.shape == (B, OUT_DIM), out.shape
    assert jnp.allclose(out, ref, atol=1e-5, rtol=1e-5), (
        "mismatch", float(jnp.max(jnp.abs(out - ref))))

    print("KERNEL_OK")
</pallas_src>

<mosaic_0001>
module attributes {stable_mosaic.version = 11 : i64} {
  func.func @_mlp_kernel(%arg0: i32, %arg1: memref<64x100xf32, #tpu.memory_space<vmem>>, %arg2: memref<100x100xf32, #tpu.memory_space<vmem>>, %arg3: memref<1x100xf32, #tpu.memory_space<vmem>>, %arg4: memref<100x12xf32, #tpu.memory_space<vmem>>, %arg5: memref<1x12xf32, #tpu.memory_space<vmem>>, %arg6: memref<64x12xf32, #tpu.memory_space<vmem>>) attributes {dimension_semantics = [#tpu.dimension_semantics<parallel>], iteration_bounds = array<i64: 1>, scalar_prefetch = 0 : i64, scratch_operands = 0 : i64, tpu.core_type = #tpu.core_type<tc>, window_params = [{transform_indices = @transform_0, window_bounds = array<i64: 64, 100>}, {pipeline_mode = #tpu.pipeline_mode<synchronous>, transform_indices = @transform_1, window_bounds = array<i64: 100, 100>}, {pipeline_mode = #tpu.pipeline_mode<synchronous>, transform_indices = @transform_2, window_bounds = array<i64: 1, 100>}, {pipeline_mode = #tpu.pipeline_mode<synchronous>, transform_indices = @transform_3, window_bounds = array<i64: 100, 12>}, {pipeline_mode = #tpu.pipeline_mode<synchronous>, transform_indices = @transform_4, window_bounds = array<i64: 1, 12>}, {transform_indices = @transform_5, window_bounds = array<i64: 64, 12>}]} {
    %c0 = arith.constant 0 : index
    %c0_0 = arith.constant 0 : index
    %0 = vector.load %arg1[%c0, %c0_0] : memref<64x100xf32, #tpu.memory_space<vmem>>, vector<64x100xf32>
    %c0_1 = arith.constant 0 : index
    %c0_2 = arith.constant 0 : index
    %1 = vector.load %arg2[%c0_1, %c0_2] : memref<100x100xf32, #tpu.memory_space<vmem>>, vector<100x100xf32>
    %cst = arith.constant dense<0.000000e+00> : vector<64x100xf32>
    %2 = tpu.matmul %0, %1, %cst {dimension_numbers = #tpu.dot_dimension_numbers<[1], [0], [0], [1], [0, 0, 1, 1], [], []>} : vector<64x100xf32>, vector<100x100xf32>, vector<64x100xf32> -> vector<64x100xf32>
    %c0_3 = arith.constant 0 : index
    %c0_4 = arith.constant 0 : index
    %3 = vector.load %arg3[%c0_3, %c0_4] : memref<1x100xf32, #tpu.memory_space<vmem>>, vector<1x100xf32>
    %4 = vector.broadcast %3 : vector<1x100xf32> to vector<64x100xf32>
    %5 = arith.addf %2, %4 : vector<64x100xf32>
    %cst_5 = arith.constant 0.000000e+00 : f32
    %6 = vector.broadcast %cst_5 : f32 to vector<64x100xf32>
    %7 = arith.maximumf %5, %6 : vector<64x100xf32>
    %c0_6 = arith.constant 0 : index
    %c0_7 = arith.constant 0 : index
    %8 = vector.load %arg4[%c0_6, %c0_7] : memref<100x12xf32, #tpu.memory_space<vmem>>, vector<100x12xf32>
    %cst_8 = arith.constant dense<0.000000e+00> : vector<64x12xf32>
    %9 = tpu.matmul %7, %8, %cst_8 {dimension_numbers = #tpu.dot_dimension_numbers<[1], [0], [0], [1], [0, 0, 1, 1], [], []>} : vector<64x100xf32>, vector<100x12xf32>, vector<64x12xf32> -> vector<64x12xf32>
    %c0_9 = arith.constant 0 : index
    %c0_10 = arith.constant 0 : index
    %10 = vector.load %arg5[%c0_9, %c0_10] : memref<1x12xf32, #tpu.memory_space<vmem>>, vector<1x12xf32>
    %11 = vector.broadcast %10 : vector<1x12xf32> to vector<64x12xf32>
    %12 = arith.addf %9, %11 : vector<64x12xf32>
    %c0_11 = arith.constant 0 : index
    %c0_12 = arith.constant 0 : index
    %13 = vector.load %arg6[%c0_11, %c0_12] : memref<64x12xf32, #tpu.memory_space<vmem>>, vector<64x12xf32>
    tpu.vector_store %arg6[%c0_11, %c0_12], %12 {strides = array<i32>} : memref<64x12xf32, #tpu.memory_space<vmem>>, vector<64x12xf32>,
    return
  }
  func.func @transform_0(%arg0: i32) -> (i32, i32) {
    %c0_i32 = arith.constant 0 : i32
    %c0_i32_0 = arith.constant 0 : i32
    return %arg0, %c0_i32 : i32, i32
  }
  func.func @transform_1(%arg0: i32) -> (i32, i32) {
    %c0_i32 = arith.constant 0 : i32
    %c0_i32_0 = arith.constant 0 : i32
    %c0_i32_1 = arith.constant 0 : i32
    return %c0_i32, %c0_i32_0 : i32, i32
  }
  func.func @transform_2(%arg0: i32) -> (i32, i32) {
    %c0_i32 = arith.constant 0 : i32
    %c0_i32_0 = arith.constant 0 : i32
    %c0_i32_1 = arith.constant 0 : i32
    return %c0_i32, %c0_i32_0 : i32, i32
  }
  func.func @transform_3(%arg0: i32) -> (i32, i32) {
    %c0_i32 = arith.constant 0 : i32
    %c0_i32_0 = arith.constant 0 : i32
    %c0_i32_1 = arith.constant 0 : i32
    return %c0_i32, %c0_i32_0 : i32, i32
  }
  func.func @transform_4(%arg0: i32) -> (i32, i32) {
    %c0_i32 = arith.constant 0 : i32
    %c0_i32_0 = arith.constant 0 : i32
    %c0_i32_1 = arith.constant 0 : i32
    return %c0_i32, %c0_i32_0 : i32, i32
  }
  func.func @transform_5(%arg0: i32) -> (i32, i32) {
    %c0_i32 = arith.constant 0 : i32
    %c0_i32_0 = arith.constant 0 : i32
    return %arg0, %c0_i32 : i32, i32
  }
}

</mosaic_0001>

<bundles_post_ra>
// kernel: tpu_custom_call.1
= control target key start
LH: loop header
LB: loop body
LE: loop exit
PB: predicated region body
PF: predicated region fallthrough
CT: control target
= control target key end

     0   :  { %10 = vsyncpa [#allocation3], 0  ;;  %s583_s18 = smov [#allocation2]   ;;  %s764_s0 = inlined_call_operand.hbm [shape: f32[64,100], index: 0, kind: input, shape index: {}]   ;;  %s765_s1 = inlined_call_operand.vmem [shape: f32[100,100], index: 1, kind: input, shape index: {}]   ;;  %s766_s2 = inlined_call_operand.vmem [shape: f32[1,100], index: 2, kind: input, shape index: {}]   ;;  %s767_s3 = inlined_call_operand.vmem [shape: f32[100,12], index: 3, kind: input, shape index: {}]   ;;  %s768_s4 = inlined_call_operand.vmem [shape: f32[1,12], index: 4, kind: input, shape index: {}]   ;;  %s769_s5 = inlined_call_operand.vmem [shape: f32[64,12], index: 5, kind: output, shape index: {}]  }
   0x1   :  { %s16_s19 = sshll.u32 %s583_s18, 4  ;;  %s559_s22 = scalar_lea.hbm %s764_s0, 1024  ;;  %s17_s19 = int_to_ptr.vmem [resolvable:$true] %s16_s19 }
   0x2   :  { %p560_p0 = scmp.ne.s32.totalorder %s764_s0, %s559_s22  ;;  %p563_p1 = scmp.lt.u32.totalorder %s559_s22, %s764_s0 }
   0x4   :  { %p565_p2 = pnand %p563_p1, %p560_p0 }
   0x6   :  { %568 = shalt.err (!%p565_p2)
}
   0x7   :  { %s569_s27 = scalar_lea.vmem %s17_s19, 1024  ;;  %p574_p4 = scmp.lt.s32.totalorder %s17_s19, %s17_s19 }
   0x8   :  { %p570_p3 = scmp.ne.s32.totalorder %s17_s19, %s569_s27  ;;  %p575_p5 = scmp.lt.s32.totalorder %s569_s27, %s569_s27 }
   0xa   :  { %p576_p6 = por %p575_p5, %p574_p4 }
   0xc   :  { %p577_p7 = pnand %p576_p6, %p570_p3 }
   0xe   :  { %580 = shalt.err (!%p577_p7)
}
   0xf   :  { %s584_s28 = smov 128   ;;  %s585_s29 = smov 8  }
  0x10   :  { %22 = dma.hbm_to_vmem [thread:$0]  %s764_s0, 1024, %s17_s19, [#allocation3], %s584_s28, %s584_s28, %s585_s29  }
  0x11   :  { %581 = dma.done.wait [#allocation3], 1024  }
  0x12   :  { %582 = vsyncadd [#allocation3], 4294966272  ;;  %v42_v0 = vld [vmem:[%s765_s1] sm:$0xff]  ;;  %v43_v1 = vld [vmem:[%s765_s1 + $0x8] sm:$0xff]  ;;  %vm62_vm0 = vcmask 818176   ;;  %vm87_vm1 = vcmask 1043456  }
  0x13   :  { %v44_v2 = vld [vmem:[%s765_s1 + $0x10] sm:$0xff]  ;;  %v508_v3 = vpack.c.bf16 %v43_v1, %v42_v0  ;;  %v45_v4 = vld [vmem:[%s765_s1 + $0x18] sm:$0xff]  ;;  %v46_v6 = vld [vmem:[%s765_s1 + $0x20] sm:$0xff]  ;;  %vm356_vm2 = vcmask 97280  }
  0x14   :  { %v512_v5 = vpack.c.bf16 %v45_v4, %v44_v2  ;;  %v47_v7 = vld [vmem:[%s765_s1 + $0x28] sm:$0xff]  ;;  %v34_v8 = vld [vmem:[#allocation2] sm:$0xff]  ;;  %v48_v10 = vld [vmem:[%s765_s1 + $0x30] sm:$0xff] }
  0x15   :  { %509 = vmatprep.subr.bf16.mxu0 %v508_v3  ;;  %v516_v9 = vpack.c.bf16 %v47_v7, %v46_v6  ;;  %458 = vmatprep.mubr.msk.f32.mxu0 %vm62_vm0, %v34_v8  ;;  %v49_v11 = vld [vmem:[%s765_s1 + $0x38] sm:$0xff]  ;;  %v204_v12 = vld [vmem:[%s767_s3] sm:$0xff]  ;;  %v205_v13 = vld [vmem:[%s767_s3 + $0x8] sm:$0xff] }
  0x16   :  { %511 = vmatpush3.bf16.msra.mxu0 %v508_v3  ;;  %v206_v14 = vld [vmem:[%s767_s3 + $0x10] sm:$0xff]  ;;  %v532_v15 = vpack.c.bf16 %v205_v13, %v204_v12  ;;  %v207_v16 = vld [vmem:[%s767_s3 + $0x18] sm:$0xff]  ;;  %v520_v17 = vpack.c.bf16 %v49_v11, %v48_v10  ;;  %v208_v19 = vld [vmem:[%s767_s3 + $0x20] sm:$0xff] }
  0x17   :  { %513 = vmatprep.subr.bf16.mxu0 %v512_v5  ;;  %v536_v18 = vpack.c.bf16 %v207_v16, %v206_v14  ;;  %v209_v20 = vld [vmem:[%s767_s3 + $0x28] sm:$0xff]  ;;  %v50_v21 = vld [vmem:[%s765_s1 + $0x40] sm:$0xff]  ;;  %v210_v25 = vld [vmem:[%s767_s3 + $0x30] sm:$0xff] }
  0x18   :  { %v51_v22 = vld [vmem:[%s765_s1 + $0x48] sm:$0xff]  ;;  %533 = vmatprep.subr.bf16.mxu1 %v532_v15  ;;  %v540_v23 = vpack.c.bf16 %v209_v20, %v208_v19  ;;  %v211_v26 = vld [vmem:[%s767_s3 + $0x38] sm:$0xff]  ;;  %v52_v27 = vld [vmem:[%s765_s1 + $0x50] sm:$0xff] }
  0x19   :  { %535 = vmatpush3.bf16.msra.mxu1 %v532_v15  ;;  %v524_v24 = vpack.c.bf16 %v51_v22, %v50_v21  ;;  %v53_v28 = vld [vmem:[%s765_s1 + $0x58] sm:$0xff]  ;;  %v544_v29 = vpack.c.bf16 %v211_v26, %v210_v25  ;;  %v212_v31 = vld [vmem:[%s767_s3 + $0x40] sm:$0xff]  ;;  %v213_v32 = vld [vmem:[%s767_s3 + $0x48] sm:$0xff] }
  0x1a   :  { %515 = vmatpush3.bf16.msra.mxu0 %v512_v5  ;;  %537 = vmatprep.subr.bf16.mxu1 %v536_v18  ;;  %v528_v30 = vpack.c.bf16 %v53_v28, %v52_v27  ;;  %v548_v33 = vpack.c.bf16 %v213_v32, %v212_v31  ;;  %v54_v34 = vld [vmem:[%s765_s1 + $0x60] sm:$0xf]  ;;  %v35_v35 = vld [vmem:[#allocation2 + $0x8] sm:$0xff]  ;;  %v36_v36 = vld [vmem:[#allocation2 + $0x10] sm:$0xff] }
  0x1b   :  { %517 = vmatprep.subr.bf16.mxu0 %v516_v9  ;;  %v37_v37 = vld [vmem:[#allocation2 + $0x18] sm:$0xff]  ;;  %v38_v38 = vld [vmem:[#allocation2 + $0x20] sm:$0xff]  ;;  %v39_v39 = vld [vmem:[#allocation2 + $0x28] sm:$0xff] }
  0x1c   :  { %v40_v40 = vld [vmem:[#allocation2 + $0x30] sm:$0xff]  ;;  %v41_v41 = vld [vmem:[#allocation2 + $0x38] sm:$0xff]  ;;  %v216_v45 = vld [vmem:[%s767_s3 + $0x60] sm:$0xf] }
  0x1d   :  { %539 = vmatpush3.bf16.msra.mxu1 %v536_v18  ;;  %v214_v42 = vld [vmem:[%s767_s3 + $0x50] sm:$0xff]  ;;  %v215_v43 = vld [vmem:[%s767_s3 + $0x58] sm:$0xff]  ;;  %v370_v46 = vld [vmem:[%s766_s2] ss:$0 sm:$0xff] }
  0x1e   :  { %519 = vmatpush3.bf16.msra.mxu0 %v516_v9  ;;  %541 = vmatprep.subr.bf16.mxu1 %v540_v23  ;;  %v552_v44 = vpack.c.bf16 %v215_v43, %v214_v42  ;;  %v380_v7 = vld [vmem:[%s768_s4] ss:$0 sm:$0xff] }
  0x1f   :  { %521 = vmatprep.subr.bf16.mxu0 %v520_v17 }
  0x21   :  { %543 = vmatpush3.bf16.msra.mxu1 %v540_v23 }
  0x22   :  { %523 = vmatpush3.bf16.msra.mxu0 %v520_v17  ;;  %545 = vmatprep.subr.bf16.mxu1 %v544_v29 }
  0x23   :  { %525 = vmatprep.subr.bf16.mxu0 %v524_v24 }
  0x25   :  { %547 = vmatpush3.bf16.msra.mxu1 %v544_v29 }
  0x26   :  { %527 = vmatpush3.bf16.msra.mxu0 %v524_v24  ;;  %549 = vmatprep.subr.bf16.mxu1 %v548_v33 }
  0x27   :  { %529 = vmatprep.subr.bf16.mxu0 %v528_v30 }
  0x29   :  { %551 = vmatpush3.bf16.msra.mxu1 %v548_v33 }
  0x2a   :  { %531 = vmatpush3.bf16.msra.mxu0 %v528_v30  ;;  %553 = vmatprep.subr.bf16.mxu1 %v552_v44 }
  0x2b   :  { %456 = vmatprep.subr.msk.mxu0 %vm87_vm1, %v54_v34 }
  0x2d   :  { %555 = vmatpush3.bf16.msra.mxu1 %v552_v44 }
  0x2e   :  { %457 = vmatpush3.msk.msra.mxu0 %vm87_vm1, %v54_v34  ;;  %494 = vmatprep.subr.msk.mxu1 %vm87_vm1, %v216_v45 }
  0x2f   :  { %459 = vmatmul.mubr.msk.f32.vlgmr.msra.gmra.mrb[0].mxu0 %vm62_vm0, %v35_v35 }
  0x30   :  { %461 = vmatprep.mubr.msk.f32.mxu0 %vm62_vm0, %v36_v36 }
  0x31   :  { %495 = vmatpush3.msk.msra.mxu1 %vm87_vm1, %v216_v45 }
  0x33   :  { %462 = vmatmul.mubr.msk.f32.gmra.mrb[2].mxu0 %vm62_vm0, %v37_v37 }
  0x34   :  { %464 = vmatprep.mubr.msk.f32.mxu0 %vm62_vm0, %v38_v38 }
  0x37   :  { %465 = vmatmul.mubr.msk.f32.gmra.mrb[4].mxu0 %vm62_vm0, %v39_v39 }
  0x38   :  { %467 = vmatprep.mubr.msk.f32.mxu0 %vm62_vm0, %v40_v40 }
  0x3b   :  { %468 = vmatmul.mubr.msk.f32.gmra.mrb[6].mxu0 %vm62_vm0, %v41_v41 }
 0x102   :  { %v460_v47 = vpop.f32.mrb[0].mxu0 }
 0x103   :  { %v163_v48 = vadd.f32 %v460_v47, %v370_v46  ;;  %v157_v49 = vpop.f32.mrb[1].mxu0 }
 0x104   :  { %v158_v50 = vadd.f32 %v370_v46, %v157_v49 }
 0x105   :  { %v197_v53 = vmax.f32 %v163_v48, 0.0 }
 0x106   :  { %v196_v51 = vmax.f32 %v158_v50, 0.0  ;;  %v463_v52 = vpop.f32.mrb[2].mxu0 }
 0x107   :  { %v173_v54 = vadd.f32 %v463_v52, %v370_v46  ;;  %v167_v55 = vpop.f32.mrb[3].mxu0 }
 0x108   :  { %v168_v56 = vadd.f32 %v370_v46, %v167_v55  ;;  %496 = vmatprep.mubr.msk.f32.mxu1 %vm62_vm0, %v196_v51 }
 0x109   :  { %497 = vmatmul.mubr.msk.f32.vlgmr.msra.gmra.mrb[0].mxu1 %vm62_vm0, %v197_v53  ;;  %v199_v59 = vmax.f32 %v173_v54, 0.0 }
 0x10a   :  { %v198_v57 = vmax.f32 %v168_v56, 0.0  ;;  %v466_v58 = vpop.f32.mrb[4].mxu0 }
 0x10b   :  { %v183_v60 = vadd.f32 %v466_v58, %v370_v46  ;;  %v177_v61 = vpop.f32.mrb[5].mxu0 }
 0x10c   :  { %v178_v62 = vadd.f32 %v370_v46, %v177_v61  ;;  %499 = vmatprep.mubr.msk.f32.mxu1 %vm62_vm0, %v198_v57 }
 0x10d   :  { %500 = vmatmul.mubr.msk.f32.gmra.mrb[2].mxu1 %vm62_vm0, %v199_v59  ;;  %v201_v1 = vmax.f32 %v183_v60, 0.0 }
 0x10e   :  { %v200_v63 = vmax.f32 %v178_v62, 0.0  ;;  %v469_v0 = vpop.f32.mrb[6].mxu0 }
 0x10f   :  { %v193_v2 = vadd.f32 %v469_v0, %v370_v46  ;;  %v187_v3 = vpop.f32.mrb[7].mxu0 }
 0x110   :  { %v188_v4 = vadd.f32 %v370_v46, %v187_v3  ;;  %502 = vmatprep.mubr.msk.f32.mxu1 %vm62_vm0, %v200_v63 }
 0x111   :  { %503 = vmatmul.mubr.msk.f32.gmra.mrb[4].mxu1 %vm62_vm0, %v201_v1  ;;  %v203_v6 = vmax.f32 %v193_v2, 0.0 }
 0x112   :  { %v202_v5 = vmax.f32 %v188_v4, 0.0 }
 0x114   :  { %505 = vmatprep.mubr.msk.f32.mxu1 %vm62_vm0, %v202_v5 }
 0x115   :  { %506 = vmatmul.mubr.msk.f32.gmra.mrb[6].mxu1 %vm62_vm0, %v203_v6 }
 0x1dc   :  { %v498_v8 = vpop.f32.mrb[0].mxu1 }
 0x1dd   :  { %v323_v9 = vadd.f32 %v498_v8, %v380_v7  ;;  %v317_v10 = vpop.f32.mrb[1].mxu1 }
 0x1de   :  { %v318_v11 = vadd.f32 %v380_v7, %v317_v10 }
 0x1df   :  { %358 = vst.msk [vmem:[%s769_s5 + $0x8] sm:$0xff] %vm356_vm2, %v323_v9 }
 0x1e0   :  { %357 = vst.msk [vmem:[%s769_s5] sm:$0xff] %vm356_vm2, %v318_v11  ;;  %v501_v12 = vpop.f32.mrb[2].mxu1 }
 0x1e1   :  { %v333_v13 = vadd.f32 %v501_v12, %v380_v7  ;;  %v327_v14 = vpop.f32.mrb[3].mxu1 }
 0x1e2   :  { %v328_v15 = vadd.f32 %v380_v7, %v327_v14 }
 0x1e3   :  { %360 = vst.msk [vmem:[%s769_s5 + $0x18] sm:$0xff] %vm356_vm2, %v333_v13 }
 0x1e4   :  { %359 = vst.msk [vmem:[%s769_s5 + $0x10] sm:$0xff] %vm356_vm2, %v328_v15  ;;  %v504_v16 = vpop.f32.mrb[4].mxu1 }
 0x1e5   :  { %v343_v17 = vadd.f32 %v504_v16, %v380_v7  ;;  %v337_v18 = vpop.f32.mrb[5].mxu1 }
 0x1e6   :  { %v338_v19 = vadd.f32 %v380_v7, %v337_v18 }
 0x1e7   :  { %362 = vst.msk [vmem:[%s769_s5 + $0x28] sm:$0xff] %vm356_vm2, %v343_v17 }
 0x1e8   :  { %361 = vst.msk [vmem:[%s769_s5 + $0x20] sm:$0xff] %vm356_vm2, %v338_v19  ;;  %v507_v20 = vpop.f32.mrb[6].mxu1 }
 0x1e9   :  { %v353_v21 = vadd.f32 %v507_v20, %v380_v7  ;;  %v347_v22 = vpop.f32.mrb[7].mxu1 }
 0x1ea   :  { %v348_v23 = vadd.f32 %v380_v7, %v347_v22 }
 0x1eb   :  { %364 = vst.msk [vmem:[%s769_s5 + $0x38] sm:$0xff] %vm356_vm2, %v353_v21 }
 0x1ec   :  { %363 = vst.msk [vmem:[%s769_s5 + $0x30] sm:$0xff] %vm356_vm2, %v348_v23 }
 0x1ed   :  { %369 = vsyncpa [#allocation3], 1 }

</bundles_post_ra>
